<compile_context>
chip_gen: v5e
topology: v5e:2x2
jax: 0.10.0
libtpu: 0.0.40
codegen_flags: <defaults>
</compile_context>

<pallas_src>
import math
import functools

import jax
import jax.numpy as jnp
from jax import lax
from jax.experimental import pallas as pl
from jax.experimental.pallas import tpu as pltpu


def _cascade_gcn_kernel(x_ref, w_ref, o_ref, *, num_layers: int, batch: int):
    """Fused CascadeGCNet forward.

    x_ref: (B, D, N) activations; w_ref: (L, D, D) stacked weights; o_ref: (B, D, N).
    Everything (~20 KiB total) stays resident in VMEM; layers and batch are
    statically unrolled inside a single grid step.
    """
    for b in range(batch):
        xb = x_ref[b].astype(jnp.float32)                       # (D, N)
        for layer in range(num_layers):
            w = w_ref[layer]                                    # (D, D)

            # adj_pre = x^T x, contracting the D axis directly (no x.T materialized).
            adj_pre = lax.dot_general(
                xb, xb, (((0,), (0,)), ((), ())),
                preferred_element_type=jnp.float32)             # (N, N), symmetric

            # Column softmax of the symmetric matrix == (row softmax)^T, which lets
            # the layer output come out directly in (D, N) layout with no out.T.
            adj_pre = adj_pre - jnp.max(adj_pre, axis=0, keepdims=True)
            p = jnp.exp(adj_pre)
            denom = jnp.sum(p, axis=0, keepdims=True)           # (1, N)
            # approx reciprocal (EUP slot) only on the last layer so the cascaded
            # softmax logits never amplify the approximation error.
            adj_sm_t = p * pl.reciprocal(
                denom, approx=(layer == num_layers - 1))        # (N, N)

            # support^T = W^T x  (D, N); again a (0,0)-contracting dot_general.
            support_t = lax.dot_general(
                w, xb, (((0,), (0,)), ((), ())),
                preferred_element_type=jnp.float32)             # (D, N)

            # out = (adj_sm @ support)^T = support^T @ adj_sm^T
            xb = jnp.dot(support_t, adj_sm_t,
                         preferred_element_type=jnp.float32)    # (D, N)

        # Final ReLU fused; store this batch element's (D, N) slab.
        o_ref[b] = jnp.maximum(xb, 0.0).astype(o_ref.dtype)


def cascade_gcn(x, weights):
    """CascadeGCNet forward. x: (B, D, N); weights: list of (D, D)."""
    B, D, N = x.shape
    L = len(weights)
    w_stacked = jnp.stack(weights, axis=0)                      # (L, D, D), 12 KiB
    kernel = functools.partial(_cascade_gcn_kernel, num_layers=L, batch=B)
    return pl.pallas_call(
        kernel,
        out_shape=jax.ShapeDtypeStruct((B, D, N), x.dtype),
        grid=(1,),                                              # single fused step
        in_specs=[
            pl.BlockSpec((B, D, N), lambda i: (0, 0, 0)),       # all activations
            pl.BlockSpec((L, D, D), lambda i: (0, 0, 0)),       # all weights, resident
        ],
        out_specs=pl.BlockSpec((B, D, N), lambda i: (0, 0, 0)),
        compiler_params=pltpu.CompilerParams(
            dimension_semantics=("arbitrary",)),
    )(x, w_stacked)


def cascade_gcn_reference(x, weights):
    """Pure-JAX reference mirroring the PyTorch forward."""
    for w in weights:
        x_t = jnp.swapaxes(x, 1, 2)                       # (B, N, D)
        adj = jax.nn.softmax(jnp.matmul(x_t, x), axis=2)  # (B, N, N)
        support = jnp.matmul(x_t, w)                      # (B, N, D)
        x = jnp.swapaxes(jnp.matmul(adj, support), 1, 2)  # (B, D, N)
    return jax.nn.relu(x)


if __name__ == "__main__":
    B, D, N = 2, 32, 16   # batch, dim (channels), nodes
    LOOP = 3

    key = jax.random.PRNGKey(0)
    kx, *kws = jax.random.split(key, 1 + LOOP)
    x = jax.random.normal(kx, (B, D, N), dtype=jnp.float32)

    # Deterministic init mirroring GraphConvNet.reset_parameters:
    # uniform(-stdv, stdv) with stdv = 1/sqrt(out_features); bias=False.
    stdv = 1.0 / math.sqrt(D)
    weights = [
        jax.random.uniform(k, (D, D), dtype=jnp.float32, minval=-stdv, maxval=stdv)
        for k in kws
    ]

    out = jax.block_until_ready(cascade_gcn(x, weights))
    ref = cascade_gcn_reference(x, weights)

    assert out.shape == (B, D, N)
    # tolerance covers the approx reciprocal used on the final layer's softmax
    assert jnp.allclose(out, ref, atol=1e-2, rtol=1e-2), "mismatch vs reference"

    print("KERNEL_OK")
</pallas_src>

<mosaic_0001>
module attributes {stable_mosaic.version = 11 : i64} {
  func.func @_cascade_gcn_kernel(%arg0: i32, %arg1: memref<2x32x16xf32, #tpu.memory_space<vmem>>, %arg2: memref<3x32x32xf32, #tpu.memory_space<vmem>>, %arg3: memref<2x32x16xf32, #tpu.memory_space<vmem>>) attributes {dimension_semantics = [#tpu.dimension_semantics<arbitrary>], iteration_bounds = array<i64: 1>, scalar_prefetch = 0 : i64, scratch_operands = 0 : i64, tpu.core_type = #tpu.core_type<tc>, window_params = [{pipeline_mode = #tpu.pipeline_mode<synchronous>, transform_indices = @transform_0, window_bounds = array<i64: 2, 32, 16>}, {pipeline_mode = #tpu.pipeline_mode<synchronous>, transform_indices = @transform_1, window_bounds = array<i64: 3, 32, 32>}, {pipeline_mode = #tpu.pipeline_mode<synchronous>, transform_indices = @transform_2, window_bounds = array<i64: 2, 32, 16>}]} {
    %c0 = arith.constant 0 : index
    %c0_0 = arith.constant 0 : index
    %c0_1 = arith.constant 0 : index
    %0 = vector.load %arg1[%c0, %c0_0, %c0_1] : memref<2x32x16xf32, #tpu.memory_space<vmem>>, vector<1x32x16xf32>
    %1 = vector.shape_cast %0 : vector<1x32x16xf32> to vector<32x16xf32>
    %c0_2 = arith.constant 0 : index
    %c0_3 = arith.constant 0 : index
    %c0_4 = arith.constant 0 : index
    %2 = vector.load %arg2[%c0_2, %c0_3, %c0_4] : memref<3x32x32xf32, #tpu.memory_space<vmem>>, vector<1x32x32xf32>
    %3 = vector.shape_cast %2 : vector<1x32x32xf32> to vector<32x32xf32>
    %cst = arith.constant dense<0.000000e+00> : vector<16x16xf32>
    %4 = tpu.matmul %1, %1, %cst {dimension_numbers = #tpu.dot_dimension_numbers<[0], [0], [1], [1], [0, 1, 1, 1], [], []>} : vector<32x16xf32>, vector<32x16xf32>, vector<16x16xf32> -> vector<16x16xf32>
    %cst_5 = arith.constant dense<0xFF800000> : vector<16xf32>
    %5 = vector.multi_reduction <maximumf>, %4, %cst_5 [0] : vector<16x16xf32> to vector<16xf32>
    %6 = vector.shape_cast %5 : vector<16xf32> to vector<1x16xf32>
    %7 = vector.broadcast %6 : vector<1x16xf32> to vector<16x16xf32>
    %8 = arith.subf %4, %7 : vector<16x16xf32>
    %9 = math.exp %8 : vector<16x16xf32>
    %cst_6 = arith.constant dense<0.000000e+00> : vector<16xf32>
    %10 = vector.multi_reduction <add>, %9, %cst_6 [0] : vector<16x16xf32> to vector<16xf32>
    %11 = vector.shape_cast %10 : vector<16xf32> to vector<1x16xf32>
    %12 = tpu.reciprocal %11 : vector<1x16xf32> -> vector<1x16xf32>
    %13 = vector.broadcast %12 : vector<1x16xf32> to vector<16x16xf32>
    %14 = arith.mulf %9, %13 : vector<16x16xf32>
    %cst_7 = arith.constant dense<0.000000e+00> : vector<32x16xf32>
    %15 = tpu.matmul %3, %1, %cst_7 {dimension_numbers = #tpu.dot_dimension_numbers<[0], [0], [1], [1], [0, 1, 1, 1], [], []>} : vector<32x32xf32>, vector<32x16xf32>, vector<32x16xf32> -> vector<32x16xf32>
    %cst_8 = arith.constant dense<0.000000e+00> : vector<32x16xf32>
    %16 = tpu.matmul %15, %14, %cst_8 {dimension_numbers = #tpu.dot_dimension_numbers<[1], [0], [0], [1], [0, 0, 1, 1], [], []>} : vector<32x16xf32>, vector<16x16xf32>, vector<32x16xf32> -> vector<32x16xf32>
    %c1 = arith.constant 1 : index
    %c0_9 = arith.constant 0 : index
    %c0_10 = arith.constant 0 : index
    %17 = vector.load %arg2[%c1, %c0_9, %c0_10] : memref<3x32x32xf32, #tpu.memory_space<vmem>>, vector<1x32x32xf32>
    %18 = vector.shape_cast %17 : vector<1x32x32xf32> to vector<32x32xf32>
    %cst_11 = arith.constant dense<0.000000e+00> : vector<16x16xf32>
    %19 = tpu.matmul %16, %16, %cst_11 {dimension_numbers = #tpu.dot_dimension_numbers<[0], [0], [1], [1], [0, 1, 1, 1], [], []>} : vector<32x16xf32>, vector<32x16xf32>, vector<16x16xf32> -> vector<16x16xf32>
    %cst_12 = arith.constant dense<0xFF800000> : vector<16xf32>
    %20 = vector.multi_reduction <maximumf>, %19, %cst_12 [0] : vector<16x16xf32> to vector<16xf32>
    %21 = vector.shape_cast %20 : vector<16xf32> to vector<1x16xf32>
    %22 = vector.broadcast %21 : vector<1x16xf32> to vector<16x16xf32>
    %23 = arith.subf %19, %22 : vector<16x16xf32>
    %24 = math.exp %23 : vector<16x16xf32>
    %cst_13 = arith.constant dense<0.000000e+00> : vector<16xf32>
    %25 = vector.multi_reduction <add>, %24, %cst_13 [0] : vector<16x16xf32> to vector<16xf32>
    %26 = vector.shape_cast %25 : vector<16xf32> to vector<1x16xf32>
    %27 = tpu.reciprocal %26 : vector<1x16xf32> -> vector<1x16xf32>
    %28 = vector.broadcast %27 : vector<1x16xf32> to vector<16x16xf32>
    %29 = arith.mulf %24, %28 : vector<16x16xf32>
    %cst_14 = arith.constant dense<0.000000e+00> : vector<32x16xf32>
    %30 = tpu.matmul %18, %16, %cst_14 {dimension_numbers = #tpu.dot_dimension_numbers<[0], [0], [1], [1], [0, 1, 1, 1], [], []>} : vector<32x32xf32>, vector<32x16xf32>, vector<32x16xf32> -> vector<32x16xf32>
    %cst_15 = arith.constant dense<0.000000e+00> : vector<32x16xf32>
    %31 = tpu.matmul %30, %29, %cst_15 {dimension_numbers = #tpu.dot_dimension_numbers<[1], [0], [0], [1], [0, 0, 1, 1], [], []>} : vector<32x16xf32>, vector<16x16xf32>, vector<32x16xf32> -> vector<32x16xf32>
    %c2 = arith.constant 2 : index
    %c0_16 = arith.constant 0 : index
    %c0_17 = arith.constant 0 : index
    %32 = vector.load %arg2[%c2, %c0_16, %c0_17] : memref<3x32x32xf32, #tpu.memory_space<vmem>>, vector<1x32x32xf32>
    %33 = vector.shape_cast %32 : vector<1x32x32xf32> to vector<32x32xf32>
    %cst_18 = arith.constant dense<0.000000e+00> : vector<16x16xf32>
    %34 = tpu.matmul %31, %31, %cst_18 {dimension_numbers = #tpu.dot_dimension_numbers<[0], [0], [1], [1], [0, 1, 1, 1], [], []>} : vector<32x16xf32>, vector<32x16xf32>, vector<16x16xf32> -> vector<16x16xf32>
    %cst_19 = arith.constant dense<0xFF800000> : vector<16xf32>
    %35 = vector.multi_reduction <maximumf>, %34, %cst_19 [0] : vector<16x16xf32> to vector<16xf32>
    %36 = vector.shape_cast %35 : vector<16xf32> to vector<1x16xf32>
    %37 = vector.broadcast %36 : vector<1x16xf32> to vector<16x16xf32>
    %38 = arith.subf %34, %37 : vector<16x16xf32>
    %39 = math.exp %38 : vector<16x16xf32>
    %cst_20 = arith.constant dense<0.000000e+00> : vector<16xf32>
    %40 = vector.multi_reduction <add>, %39, %cst_20 [0] : vector<16x16xf32> to vector<16xf32>
    %41 = vector.shape_cast %40 : vector<16xf32> to vector<1x16xf32>
    %42 = tpu.reciprocal %41 {approx = true} : vector<1x16xf32> -> vector<1x16xf32>
    %43 = vector.broadcast %42 : vector<1x16xf32> to vector<16x16xf32>
    %44 = arith.mulf %39, %43 : vector<16x16xf32>
    %cst_21 = arith.constant dense<0.000000e+00> : vector<32x16xf32>
    %45 = tpu.matmul %33, %31, %cst_21 {dimension_numbers = #tpu.dot_dimension_numbers<[0], [0], [1], [1], [0, 1, 1, 1], [], []>} : vector<32x32xf32>, vector<32x16xf32>, vector<32x16xf32> -> vector<32x16xf32>
    %cst_22 = arith.constant dense<0.000000e+00> : vector<32x16xf32>
    %46 = tpu.matmul %45, %44, %cst_22 {dimension_numbers = #tpu.dot_dimension_numbers<[1], [0], [0], [1], [0, 0, 1, 1], [], []>} : vector<32x16xf32>, vector<16x16xf32>, vector<32x16xf32> -> vector<32x16xf32>
    %cst_23 = arith.constant 0.000000e+00 : f32
    %47 = vector.broadcast %cst_23 : f32 to vector<32x16xf32>
    %48 = arith.maximumf %46, %47 : vector<32x16xf32>
    %c0_24 = arith.constant 0 : index
    %c0_25 = arith.constant 0 : index
    %c0_26 = arith.constant 0 : index
    %49 = vector.load %arg3[%c0_24, %c0_25, %c0_26] : memref<2x32x16xf32, #tpu.memory_space<vmem>>, vector<1x32x16xf32>
    %50 = vector.shape_cast %49 : vector<1x32x16xf32> to vector<32x16xf32>
    %51 = vector.shape_cast %48 : vector<32x16xf32> to vector<1x32x16xf32>
    tpu.vector_store %arg3[%c0_24, %c0_25, %c0_26], %51 {strides = array<i32>} : memref<2x32x16xf32, #tpu.memory_space<vmem>>, vector<1x32x16xf32>,
    %c1_27 = arith.constant 1 : index
    %c0_28 = arith.constant 0 : index
    %c0_29 = arith.constant 0 : index
    %52 = vector.load %arg1[%c1_27, %c0_28, %c0_29] : memref<2x32x16xf32, #tpu.memory_space<vmem>>, vector<1x32x16xf32>
    %53 = vector.shape_cast %52 : vector<1x32x16xf32> to vector<32x16xf32>
    %c0_30 = arith.constant 0 : index
    %c0_31 = arith.constant 0 : index
    %c0_32 = arith.constant 0 : index
    %54 = vector.load %arg2[%c0_30, %c0_31, %c0_32] : memref<3x32x32xf32, #tpu.memory_space<vmem>>, vector<1x32x32xf32>
    %55 = vector.shape_cast %54 : vector<1x32x32xf32> to vector<32x32xf32>
    %cst_33 = arith.constant dense<0.000000e+00> : vector<16x16xf32>
    %56 = tpu.matmul %53, %53, %cst_33 {dimension_numbers = #tpu.dot_dimension_numbers<[0], [0], [1], [1], [0, 1, 1, 1], [], []>} : vector<32x16xf32>, vector<32x16xf32>, vector<16x16xf32> -> vector<16x16xf32>
    %cst_34 = arith.constant dense<0xFF800000> : vector<16xf32>
    %57 = vector.multi_reduction <maximumf>, %56, %cst_34 [0] : vector<16x16xf32> to vector<16xf32>
    %58 = vector.shape_cast %57 : vector<16xf32> to vector<1x16xf32>
    %59 = vector.broadcast %58 : vector<1x16xf32> to vector<16x16xf32>
    %60 = arith.subf %56, %59 : vector<16x16xf32>
    %61 = math.exp %60 : vector<16x16xf32>
    %cst_35 = arith.constant dense<0.000000e+00> : vector<16xf32>
    %62 = vector.multi_reduction <add>, %61, %cst_35 [0] : vector<16x16xf32> to vector<16xf32>
    %63 = vector.shape_cast %62 : vector<16xf32> to vector<1x16xf32>
    %64 = tpu.reciprocal %63 : vector<1x16xf32> -> vector<1x16xf32>
    %65 = vector.broadcast %64 : vector<1x16xf32> to vector<16x16xf32>
    %66 = arith.mulf %61, %65 : vector<16x16xf32>
    %cst_36 = arith.constant dense<0.000000e+00> : vector<32x16xf32>
    %67 = tpu.matmul %55, %53, %cst_36 {dimension_numbers = #tpu.dot_dimension_numbers<[0], [0], [1], [1], [0, 1, 1, 1], [], []>} : vector<32x32xf32>, vector<32x16xf32>, vector<32x16xf32> -> vector<32x16xf32>
    %cst_37 = arith.constant dense<0.000000e+00> : vector<32x16xf32>
    %68 = tpu.matmul %67, %66, %cst_37 {dimension_numbers = #tpu.dot_dimension_numbers<[1], [0], [0], [1], [0, 0, 1, 1], [], []>} : vector<32x16xf32>, vector<16x16xf32>, vector<32x16xf32> -> vector<32x16xf32>
    %c1_38 = arith.constant 1 : index
    %c0_39 = arith.constant 0 : index
    %c0_40 = arith.constant 0 : index
    %69 = vector.load %arg2[%c1_38, %c0_39, %c0_40] : memref<3x32x32xf32, #tpu.memory_space<vmem>>, vector<1x32x32xf32>
    %70 = vector.shape_cast %69 : vector<1x32x32xf32> to vector<32x32xf32>
    %cst_41 = arith.constant dense<0.000000e+00> : vector<16x16xf32>
    %71 = tpu.matmul %68, %68, %cst_41 {dimension_numbers = #tpu.dot_dimension_numbers<[0], [0], [1], [1], [0, 1, 1, 1], [], []>} : vector<32x16xf32>, vector<32x16xf32>, vector<16x16xf32> -> vector<16x16xf32>
    %cst_42 = arith.constant dense<0xFF800000> : vector<16xf32>
    %72 = vector.multi_reduction <maximumf>, %71, %cst_42 [0] : vector<16x16xf32> to vector<16xf32>
    %73 = vector.shape_cast %72 : vector<16xf32> to vector<1x16xf32>
    %74 = vector.broadcast %73 : vector<1x16xf32> to vector<16x16xf32>
    %75 = arith.subf %71, %74 : vector<16x16xf32>
    %76 = math.exp %75 : vector<16x16xf32>
    %cst_43 = arith.constant dense<0.000000e+00> : vector<16xf32>
    %77 = vector.multi_reduction <add>, %76, %cst_43 [0] : vector<16x16xf32> to vector<16xf32>
    %78 = vector.shape_cast %77 : vector<16xf32> to vector<1x16xf32>
    %79 = tpu.reciprocal %78 : vector<1x16xf32> -> vector<1x16xf32>
    %80 = vector.broadcast %79 : vector<1x16xf32> to vector<16x16xf32>
    %81 = arith.mulf %76, %80 : vector<16x16xf32>
    %cst_44 = arith.constant dense<0.000000e+00> : vector<32x16xf32>
    %82 = tpu.matmul %70, %68, %cst_44 {dimension_numbers = #tpu.dot_dimension_numbers<[0], [0], [1], [1], [0, 1, 1, 1], [], []>} : vector<32x32xf32>, vector<32x16xf32>, vector<32x16xf32> -> vector<32x16xf32>
    %cst_45 = arith.constant dense<0.000000e+00> : vector<32x16xf32>
    %83 = tpu.matmul %82, %81, %cst_45 {dimension_numbers = #tpu.dot_dimension_numbers<[1], [0], [0], [1], [0, 0, 1, 1], [], []>} : vector<32x16xf32>, vector<16x16xf32>, vector<32x16xf32> -> vector<32x16xf32>
    %c2_46 = arith.constant 2 : index
    %c0_47 = arith.constant 0 : index
    %c0_48 = arith.constant 0 : index
    %84 = vector.load %arg2[%c2_46, %c0_47, %c0_48] : memref<3x32x32xf32, #tpu.memory_space<vmem>>, vector<1x32x32xf32>
    %85 = vector.shape_cast %84 : vector<1x32x32xf32> to vector<32x32xf32>
    %cst_49 = arith.constant dense<0.000000e+00> : vector<16x16xf32>
    %86 = tpu.matmul %83, %83, %cst_49 {dimension_numbers = #tpu.dot_dimension_numbers<[0], [0], [1], [1], [0, 1, 1, 1], [], []>} : vector<32x16xf32>, vector<32x16xf32>, vector<16x16xf32> -> vector<16x16xf32>
    %cst_50 = arith.constant dense<0xFF800000> : vector<16xf32>
    %87 = vector.multi_reduction <maximumf>, %86, %cst_50 [0] : vector<16x16xf32> to vector<16xf32>
    %88 = vector.shape_cast %87 : vector<16xf32> to vector<1x16xf32>
    %89 = vector.broadcast %88 : vector<1x16xf32> to vector<16x16xf32>
    %90 = arith.subf %86, %89 : vector<16x16xf32>
    %91 = math.exp %90 : vector<16x16xf32>
    %cst_51 = arith.constant dense<0.000000e+00> : vector<16xf32>
    %92 = vector.multi_reduction <add>, %91, %cst_51 [0] : vector<16x16xf32> to vector<16xf32>
    %93 = vector.shape_cast %92 : vector<16xf32> to vector<1x16xf32>
    %94 = tpu.reciprocal %93 {approx = true} : vector<1x16xf32> -> vector<1x16xf32>
    %95 = vector.broadcast %94 : vector<1x16xf32> to vector<16x16xf32>
    %96 = arith.mulf %91, %95 : vector<16x16xf32>
    %cst_52 = arith.constant dense<0.000000e+00> : vector<32x16xf32>
    %97 = tpu.matmul %85, %83, %cst_52 {dimension_numbers = #tpu.dot_dimension_numbers<[0], [0], [1], [1], [0, 1, 1, 1], [], []>} : vector<32x32xf32>, vector<32x16xf32>, vector<32x16xf32> -> vector<32x16xf32>
    %cst_53 = arith.constant dense<0.000000e+00> : vector<32x16xf32>
    %98 = tpu.matmul %97, %96, %cst_53 {dimension_numbers = #tpu.dot_dimension_numbers<[1], [0], [0], [1], [0, 0, 1, 1], [], []>} : vector<32x16xf32>, vector<16x16xf32>, vector<32x16xf32> -> vector<32x16xf32>
    %cst_54 = arith.constant 0.000000e+00 : f32
    %99 = vector.broadcast %cst_54 : f32 to vector<32x16xf32>
    %100 = arith.maximumf %98, %99 : vector<32x16xf32>
    %c1_55 = arith.constant 1 : index
    %c0_56 = arith.constant 0 : index
    %c0_57 = arith.constant 0 : index
    %101 = vector.load %arg3[%c1_55, %c0_56, %c0_57] : memref<2x32x16xf32, #tpu.memory_space<vmem>>, vector<1x32x16xf32>
    %102 = vector.shape_cast %101 : vector<1x32x16xf32> to vector<32x16xf32>
    %103 = vector.shape_cast %100 : vector<32x16xf32> to vector<1x32x16xf32>
    tpu.vector_store %arg3[%c1_55, %c0_56, %c0_57], %103 {strides = array<i32>} : memref<2x32x16xf32, #tpu.memory_space<vmem>>, vector<1x32x16xf32>,
    return
  }
  func.func @transform_0(%arg0: i32) -> (i32, i32, i32) {
    %c0_i32 = arith.constant 0 : i32
    %c0_i32_0 = arith.constant 0 : i32
    %c0_i32_1 = arith.constant 0 : i32
    %c0_i32_2 = arith.constant 0 : i32
    return %c0_i32, %c0_i32_0, %c0_i32_1 : i32, i32, i32
  }
  func.func @transform_1(%arg0: i32) -> (i32, i32, i32) {
    %c0_i32 = arith.constant 0 : i32
    %c0_i32_0 = arith.constant 0 : i32
    %c0_i32_1 = arith.constant 0 : i32
    %c0_i32_2 = arith.constant 0 : i32
    return %c0_i32, %c0_i32_0, %c0_i32_1 : i32, i32, i32
  }
  func.func @transform_2(%arg0: i32) -> (i32, i32, i32) {
    %c0_i32 = arith.constant 0 : i32
    %c0_i32_0 = arith.constant 0 : i32
    %c0_i32_1 = arith.constant 0 : i32
    %c0_i32_2 = arith.constant 0 : i32
    return %c0_i32, %c0_i32_0, %c0_i32_1 : i32, i32, i32
  }
}

</mosaic_0001>

<bundles_post_ra>
// kernel: tpu_custom_call.1
= control target key start
LH: loop header
LB: loop body
LE: loop exit
PB: predicated region body
PF: predicated region fallthrough
CT: control target
= control target key end

     0   :  { %vm51_vm0 = vcmask 261120   ;;  %vm81_vm1 = vcmask 130048   ;;  %s1715_s0 = inlined_call_operand.vmem [shape: f32[2,32,16], index: 0, kind: input, shape index: {}]   ;;  %s1716_s1 = inlined_call_operand.vmem [shape: f32[3,32,32], index: 1, kind: input, shape index: {}]   ;;  %s1717_s2 = inlined_call_operand.vmem [shape: f32[2,32,16], index: 2, kind: output, shape index: {}]  }
   0x1   :  { %v11_v0 = vld [vmem:[%s1715_s0] sm:$0xff]  ;;  %v14_v1 = vld [vmem:[%s1715_s0 + $0x18] sm:$0xff]  ;;  %v13_v3 = vld [vmem:[%s1715_s0 + $0x10] sm:$0xff] }
   0x2   :  { %19 = vxpose.xlu0.b32.start [1/4] (short) (narrow) %v11_v0, 16  ;;  %v1486_v2 = vld [vmem:[%s1716_s1] sm:$0xff]  ;;  %70 = vmatpush.msra.mxu0 %v14_v1  ;;  %v12_v4 = vld [vmem:[%s1715_s0 + $0x8] sm:$0xff]  ;;  %v1504_v6 = vld [vmem:[%s1716_s1 + $0x10] sm:$0xff] }
   0x3   :  { %122 = vxpose.xlu1.b32.start [1/4] (short) (narrow) %v1486_v2, 32  ;;  %1417 = vmatpush.msra.mxu2 %v14_v1  ;;  %v1498_v5 = vld [vmem:[%s1716_s1 + $0x8] sm:$0xff]  ;;  %v1510_v7 = vld [vmem:[%s1716_s1 + $0x18] sm:$0xff]  ;;  %v1530_v57 = vld [vmem:[%s1716_s1 + $0x20] sm:$0xff] }
   0x4   :  { %178 = vmatpush.msra.mxu1 %v14_v1  ;;  %71 = vmatpush.msra.mxu0 %v13_v3  ;;  %v1536_v58 = vld [vmem:[%s1715_s0 + $0x20] sm:$0xff]  ;;  %v1542_v59 = vld [vmem:[%s1716_s1 + $0x28] sm:$0xff]  ;;  %v1554_v62 = vld [vmem:[%s1716_s1 + $0x30] sm:$0xff] }
   0x5   :  { %1418 = vmatpush.msra.mxu2 %v13_v3  ;;  %v1547_v60 = vld [vmem:[%s1715_s0 + $0x28] sm:$0xff]  ;;  %v1559_v63 = vld [vmem:[%s1715_s0 + $0x30] sm:$0xff] }
   0x6   :  { %179 = vmatpush.msra.mxu1 %v13_v3  ;;  %72 = vmatpush.msra.mxu0 %v12_v4 }
   0x7   :  { %1419 = vmatpush.msra.mxu2 %v12_v4 }
   0x8   :  { %180 = vmatpush.msra.mxu1 %v12_v4  ;;  %73 = vmatpush.msra.mxu0 %v11_v0 }
   0x9   :  { %1420 = vmatpush.msra.mxu2 %v11_v0 }
   0xa   :  { %20 = vxpose.xlu0.b32.cont [2/4] (short) (narrow) %v12_v4, 16  ;;  %181 = vmatpush.msra.mxu1 %v11_v0  ;;  %v1571_v4 = vld [vmem:[%s1715_s0 + $0x38] sm:$0xff] }
   0xb   :  { %123 = vxpose.xlu1.b32.cont [2/4] (short) (narrow) %v1498_v5, 32 }
  0x12   :  { %21 = vxpose.xlu0.b32.cont [3/4] (short) (narrow) %v13_v3, 16  ;;  %v1566_v3 = vld [vmem:[%s1716_s1 + $0x38] sm:$0xff] }
  0x13   :  { %124 = vxpose.xlu1.b32.cont [3/4] (short) (narrow) %v1504_v6, 32 }
  0x1a   :  { %22 = vxpose.xlu0.b32.end [4/4] (short) (narrow) %v14_v1, 16 }
  0x1b   :  { %125 = vxpose.xlu1.b32.end [4/4] (short) (narrow) %v1510_v7, 32 }
  0x22   :  { %342 = vxpose.xlu0.b32.start [1/4] (short) (narrow) %v1530_v57, 32 }
  0x23   :  { %680 = vxpose.xlu1.b32.start [1/4] (short) (narrow) %v1536_v58, 16 }
  0x2a   :  { %343 = vxpose.xlu0.b32.cont [2/4] (short) (narrow) %v1542_v59, 32 }
  0x2b   :  { %681 = vxpose.xlu1.b32.cont [2/4] (short) (narrow) %v1547_v60, 16 }
  0x32   :  { %344 = vxpose.xlu0.b32.cont [3/4] (short) (narrow) %v1554_v62, 32 }
  0x33   :  { %682 = vxpose.xlu1.b32.cont [3/4] (short) (narrow) %v1559_v63, 16 }
  0x3a   :  { %345 = vxpose.xlu0.b32.end [4/4] (short) (narrow) %v1566_v3, 32 }
  0x3b   :  { %683 = vxpose.xlu1.b32.end [4/4] (short) (narrow) %v1571_v4, 16 }
  0xa6   :  { %v35_v8 = vpop.trf.xlu0 }
  0xa7   :  { %1333 = vmatmul.msk.f32.vlgmr.msra.gmra.mxu0 %vm51_vm0, %v35_v8  ;;  %v138_v9 = vpop.trf.xlu1 }
  0xa8   :  { %1335 = vmatmul.msk.f32.vlgmr.msra.gmra.mxu1 %vm51_vm0, %v138_v9 }
  0xae   :  { %v36_v10 = vpop.trf.xlu0 }
  0xaf   :  { %1334 = vmatmul.msk.f32.vlgmr.msra.gmra.mxu2 %vm51_vm0, %v36_v10  ;;  %v139_v11 = vpop.trf.xlu1 }
  0xb0   :  { %1336 = vmatmul.msk.f32.gmra.mxu1 %vm51_vm0, %v139_v11 }
  0xb7   :  { %v140_v12 = vpop.trf.xlu1 }
  0xb8   :  { %1337 = vmatmul.msk.f32.gmra.mxu1 %vm51_vm0, %v140_v12 }
  0xbf   :  { %v141_v13 = vpop.trf.xlu1 }
  0xc0   :  { %1338 = vmatmul.msk.f32.gmra.mxu1 %vm51_vm0, %v141_v13 }
 0x124   :  { %v75_v14 = vpop.f32.mrf.mxu0 }
 0x125   :  { %v82_v16 = vsel %vm81_vm1, %v75_v14, -inf  ;;  %v183_v47 = vpop.f32.mrf.mxu1 }
 0x12d   :  { %v186_v53 = vpop.f32.mrf.mxu1 }
 0x132   :  { %v78_v15 = vpop.f32.mrf.mxu2 }
 0x133   :  { %v83_v17 = vsel %vm81_vm1, %v78_v15, -inf }
 0x134   :  { %v84_v18 = vmax.f32 %v82_v16, %v83_v17 }
 0x135   :  { %v189_v54 = vpop.f32.mrf.mxu1 }
 0x136   :  { %v85_v19 = vrot.slane %v84_v18, 4 }
 0x138   :  { %v86_v20 = vmax.f32 %v84_v18, %v85_v19 }
 0x13a   :  { %v87_v21 = vrot.slane %v86_v20, 2 }
 0x13c   :  { %v88_v22 = vmax.f32 %v86_v20, %v87_v21 }
 0x13d   :  { %v192_v55 = vpop.f32.mrf.mxu1 }
 0x13e   :  { %v89_v23 = vrot.slane %v88_v22, 1 }
 0x140   :  { %v90_v24 = vmax.f32 %v88_v22, %v89_v23 }
 0x142   :  { %v91_v25 = vsub.f32 %v75_v14, %v90_v24  ;;  %v92_v26 = vsub.f32 %v78_v15, %v90_v24 }
 0x144   :  { %v93_v27 = vmul.f32 1.442695, %v91_v25  ;;  %v95_v28 = vmul.f32 1.442695, %v92_v26 }
 0x146   :  { %1426 = vpow2.f32 %v93_v27 }
 0x147   :  { %1428 = vpow2.f32 %v95_v28 }
 0x14c   :  { %v1427_v29 = vpop.eup %1426 }
 0x14d   :  { %v1429_v30 = vpop.eup %1428  ;;  %v97_v31 = vsel %vm81_vm1, %v1427_v29, 0.0 }
 0x14e   :  { %v98_v32 = vsel %vm81_vm1, %v1429_v30, 0.0 }
 0x14f   :  { %v99_v33 = vadd.f32 %v98_v32, %v97_v31 }
 0x151   :  { %v100_v34 = vrot.slane %v99_v33, 4 }
 0x153   :  { %v101_v35 = vadd.f32 %v100_v34, %v99_v33 }
 0x155   :  { %v102_v36 = vrot.slane %v101_v35, 2 }
 0x157   :  { %v103_v37 = vadd.f32 %v102_v36, %v101_v35 }
 0x159   :  { %v104_v38 = vrot.slane %v103_v37, 1 }
 0x15b   :  { %v105_v39 = vadd.f32 %v104_v38, %v103_v37 }
 0x15d   :  { %1430 = vrcp.f32 %v105_v39  ;;  %v117_v43 = vand.u32 2147483648, %v105_v39  ;;  %v115_v45 = vand.u32 2147483647, %v105_v39  ;;  %vm111_vm3 = vweird.f32 %v105_v39 }
 0x15f   :  { %v118_v48 = vor.u32 1.1754944e-38, %v117_v43  ;;  %vm116_vm5 = vcmp.eq.f32.partialorder %v115_v45, 8.507059e+37 }
 0x163   :  { %v1431_v40 = vpop.eup %1430 }
 0x164   :  { %v107_v41 = vmul.f32 %v1431_v40, %v105_v39  ;;  %vm112_vm2 = vweird.f32 %v1431_v40 }
 0x165   :  { %vm113_vm4 = vmor %vm111_vm3, %vm112_vm2 }
 0x166   :  { %v108_v42 = vsub.f32 1.0, %v107_v41 }
 0x168   :  { %v109_v44 = vmul.f32 %v1431_v40, %v108_v42 }
 0x16a   :  { %v110_v46 = vadd.f32 %v1431_v40, %v109_v44 }
 0x16c   :  { %v114_v49 = vsel %vm113_vm4, %v1431_v40, %v110_v46 }
 0x16d   :  { %v119_v50 = vsel %vm116_vm5, %v118_v48, %v114_v49 }
 0x16e   :  { %v121_v51 = vmul.f32 %v1429_v30, %v119_v50  ;;  %v120_v52 = vmul.f32 %v1427_v29, %v119_v50 }
 0x170   :  { %221 = vmatpush.msrb.mxu2 %v121_v51 }
 0x172   :  { %222 = vmatpush.msrb.mxu2 %v120_v52 }
 0x173   :  { %1339 = vmatmul.msk.f32.vlgmr.msrb.gmra.mxu2 %vm81_vm1, %v183_v47 }
 0x17b   :  { %1340 = vmatmul.msk.f32.gmra.mxu2 %vm81_vm1, %v186_v53 }
 0x183   :  { %1341 = vmatmul.msk.f32.gmra.mxu2 %vm81_vm1, %v189_v54 }
 0x18b   :  { %1342 = vmatmul.msk.f32.gmra.mxu2 %vm81_vm1, %v192_v55 }
 0x1f6   :  { %v224_v56 = vpop.f32.mrf.mxu2 }
 0x1f7   :  { %241 = vxpose.xlu2.b32.start [1/4] (short) (narrow) %v224_v56, 16 }
 0x1fe   :  { %v227_v61 = vpop.f32.mrf.mxu2 }
 0x1ff   :  { %242 = vxpose.xlu2.b32.cont [2/4] (short) (narrow) %v227_v61, 16 }
 0x206   :  { %v230_v0 = vpop.f32.mrf.mxu2 }
 0x207   :  { %243 = vxpose.xlu2.b32.cont [3/4] (short) (narrow) %v230_v0, 16 }
 0x20e   :  { %v233_v1 = vpop.f32.mrf.mxu2 }
 0x20f   :  { %244 = vxpose.xlu2.b32.end [4/4] (short) (narrow) %v233_v1, 16  ;;  %291 = vmatpush.msrb.mxu1 %v233_v1 }
 0x210   :  { %1421 = vmatpush.msra.mxu3 %v233_v1  ;;  %398 = vmatpush.msrb.mxu0 %v233_v1 }
 0x211   :  { %292 = vmatpush.msrb.mxu1 %v230_v0 }
 0x212   :  { %1422 = vmatpush.msra.mxu3 %v230_v0  ;;  %399 = vmatpush.msrb.mxu0 %v230_v0 }
 0x213   :  { %293 = vmatpush.msrb.mxu1 %v227_v61 }
 0x214   :  { %1423 = vmatpush.msra.mxu3 %v227_v61  ;;  %400 = vmatpush.msrb.mxu0 %v227_v61 }
 0x215   :  { %294 = vmatpush.msrb.mxu1 %v224_v56 }
 0x216   :  { %1424 = vmatpush.msra.mxu3 %v224_v56  ;;  %401 = vmatpush.msrb.mxu0 %v224_v56 }
 0x217   :  { %781 = vxpose.xlu2.b32.start [1/4] (short) (narrow) %v1486_v2, 32  ;;  %v358_v2 = vpop.trf.xlu0 }
 0x218   :  { %730 = vmatpush.msra.mxu0 %v1571_v4 }
 0x219   :  { %1349 = vmatmul.msk.f32.vlgmr.msrb.gmra.mxu0 %vm51_vm0, %v358_v2 }
 0x21a   :  { %731 = vmatpush.msra.mxu0 %v1559_v63 }
 0x21c   :  { %732 = vmatpush.msra.mxu0 %v1547_v60 }
 0x21e   :  { %733 = vmatpush.msra.mxu0 %v1536_v58 }
 0x21f   :  { %782 = vxpose.xlu2.b32.cont [2/4] (short) (narrow) %v1498_v5, 32  ;;  %v359_v10 = vpop.trf.xlu0 }
 0x221   :  { %1350 = vmatmul.msk.f32.gmra.mxu0 %vm51_vm0, %v359_v10 }
 0x227   :  { %783 = vxpose.xlu2.b32.cont [3/4] (short) (narrow) %v1504_v6, 32  ;;  %v360_v11 = vpop.trf.xlu0  ;;  %v696_v6 = vpop.trf.xlu1 }
 0x229   :  { %1351 = vmatmul.msk.f32.gmra.mxu0 %vm51_vm0, %v360_v11 }
 0x22f   :  { %784 = vxpose.xlu2.b32.end [4/4] (short) (narrow) %v1510_v7, 32  ;;  %v361_v5 = vpop.trf.xlu0  ;;  %v697_v7 = vpop.trf.xlu1 }
 0x231   :  { %1352 = vmatmul.msk.f32.gmra.mxu0 %vm51_vm0, %v361_v5 }
 0x239   :  { %1375 = vmatmul.msk.f32.vlgmr.msra.gmra.mxu0 %vm51_vm0, %v696_v6 }
 0x241   :  { %1376 = vmatmul.msk.f32.gmra.mxu0 %vm51_vm0, %v697_v7 }
 0x290   :  { %v257_v8 = vpop.trf.xlu2 }
 0x291   :  { %1347 = vmatmul.msk.f32.vlgmr.msrb.gmra.mxu1 %vm51_vm0, %v257_v8 }
 0x296   :  { %v403_v35 = vpop.f32.mrf.mxu0 }
 0x298   :  { %v258_v9 = vpop.trf.xlu2 }
 0x299   :  { %1348 = vmatmul.msk.f32.vlgmr.msra.gmra.mxu3 %vm51_vm0, %v258_v9 }
 0x29e   :  { %v406_v39 = vpop.f32.mrf.mxu0 }
 0x2a6   :  { %v409_v46 = vpop.f32.mrf.mxu0 }
 0x2ae   :  { %v412_v53 = vpop.f32.mrf.mxu0 }
 0x2b6   :  { %v735_v54 = vpop.f32.mrf.mxu0 }
 0x2b7   :  { %v741_v55 = vsel %vm81_vm1, %v735_v54, -inf }
 0x2be   :  { %v738_v56 = vpop.f32.mrf.mxu0 }
 0x2bf   :  { %v742_v61 = vsel %vm81_vm1, %v738_v56, -inf }
 0x2c0   :  { %v743_v0 = vmax.f32 %v741_v55, %v742_v61 }
 0x2c2   :  { %v744_v1 = vrot.slane %v743_v0, 4 }
 0x2c4   :  { %v745_v8 = vmax.f32 %v743_v0, %v744_v1 }
 0x30e   :  { %v296_v12 = vpop.f32.mrf.mxu1 }
 0x30f   :  { %v302_v14 = vsel %vm81_vm1, %v296_v12, -inf }
 0x31c   :  { %v299_v13 = vpop.f32.mrf.mxu3 }
 0x31d   :  { %v303_v15 = vsel %vm81_vm1, %v299_v13, -inf }
 0x31e   :  { %v304_v16 = vmax.f32 %v302_v14, %v303_v15 }
 0x320   :  { %v305_v17 = vrot.slane %v304_v16, 4 }
 0x322   :  { %v306_v18 = vmax.f32 %v304_v16, %v305_v17 }
 0x324   :  { %v307_v19 = vrot.slane %v306_v18, 2 }
 0x326   :  { %v308_v20 = vmax.f32 %v306_v18, %v307_v19 }
 0x328   :  { %v309_v21 = vrot.slane %v308_v20, 1 }
 0x32a   :  { %v310_v22 = vmax.f32 %v308_v20, %v309_v21 }
 0x32c   :  { %v311_v23 = vsub.f32 %v296_v12, %v310_v22  ;;  %v312_v24 = vsub.f32 %v299_v13, %v310_v22 }
 0x32e   :  { %v313_v25 = vmul.f32 1.442695, %v311_v23  ;;  %v315_v26 = vmul.f32 1.442695, %v312_v24 }
 0x330   :  { %1432 = vpow2.f32 %v313_v25 }
 0x331   :  { %1434 = vpow2.f32 %v315_v26 }
 0x336   :  { %v1433_v27 = vpop.eup %1432 }
 0x337   :  { %v1435_v28 = vpop.eup %1434  ;;  %v317_v29 = vsel %vm81_vm1, %v1433_v27, 0.0 }
 0x338   :  { %v318_v30 = vsel %vm81_vm1, %v1435_v28, 0.0 }
 0x339   :  { %v319_v31 = vadd.f32 %v318_v30, %v317_v29 }
 0x33b   :  { %v320_v32 = vrot.slane %v319_v31, 4 }
 0x33d   :  { %v321_v33 = vadd.f32 %v320_v32, %v319_v31 }
 0x33f   :  { %v322_v34 = vrot.slane %v321_v33, 2 }
 0x341   :  { %v323_v36 = vadd.f32 %v322_v34, %v321_v33 }
 0x343   :  { %v324_v37 = vrot.slane %v323_v36, 1 }
 0x345   :  { %v325_v38 = vadd.f32 %v324_v37, %v323_v36 }
 0x347   :  { %1436 = vrcp.f32 %v325_v38  ;;  %v337_v43 = vand.u32 2147483648, %v325_v38  ;;  %v335_v45 = vand.u32 2147483647, %v325_v38  ;;  %vm331_vm7 = vweird.f32 %v325_v38 }
 0x349   :  { %v338_v48 = vor.u32 1.1754944e-38, %v337_v43  ;;  %vm336_vm9 = vcmp.eq.f32.partialorder %v335_v45, 8.507059e+37  ;;  %v1359_v43 = vld [vmem:[%s1716_s1 + $0x50] sm:$0xff]  ;;  %v1360_v45 = vld [vmem:[%s1716_s1 + $0x58] sm:$0xff] }
 0x34d   :  { %v1437_v40 = vpop.eup %1436 }
 0x34e   :  { %v327_v41 = vmul.f32 %v1437_v40, %v325_v38  ;;  %vm332_vm6 = vweird.f32 %v1437_v40 }
 0x34f   :  { %vm333_vm8 = vmor %vm331_vm7, %vm332_vm6 }
 0x350   :  { %v328_v42 = vsub.f32 1.0, %v327_v41  ;;  %v1358_v41 = vld [vmem:[%s1716_s1 + $0x48] sm:$0xff] }
 0x352   :  { %v329_v44 = vmul.f32 %v1437_v40, %v328_v42 }
 0x354   :  { %v330_v47 = vadd.f32 %v1437_v40, %v329_v44 }
 0x356   :  { %v334_v49 = vsel %vm333_vm8, %v1437_v40, %v330_v47  ;;  %v1357_v40 = vld [vmem:[%s1716_s1 + $0x40] sm:$0xff] }
 0x357   :  { %v339_v50 = vsel %vm336_vm9, %v338_v48, %v334_v49  ;;  %549 = vxpose.xlu1.b32.start [1/4] (short) (narrow) %v1357_v40, 32 }
 0x358   :  { %v341_v51 = vmul.f32 %v1435_v28, %v339_v50  ;;  %v340_v52 = vmul.f32 %v1433_v27, %v339_v50 }
 0x35a   :  { %441 = vmatpush.msrb.mxu3 %v341_v51 }
 0x35c   :  { %442 = vmatpush.msrb.mxu3 %v340_v52 }
 0x35d   :  { %1353 = vmatmul.msk.f32.vlgmr.msrb.gmra.mxu3 %vm81_vm1, %v403_v35 }
 0x35e   :  { %837 = vmatpush.msra.mxu3 %v1571_v4  ;;  %v797_v4 = vpop.trf.xlu2 }
 0x35f   :  { %550 = vxpose.xlu1.b32.cont [2/4] (short) (narrow) %v1358_v41, 32 }
 0x360   :  { %838 = vmatpush.msra.mxu3 %v1559_v63  ;;  %v746_v63 = vrot.slane %v745_v8, 2 }
 0x362   :  { %839 = vmatpush.msra.mxu3 %v1547_v60  ;;  %v747_v60 = vmax.f32 %v745_v8, %v746_v63 }
 0x364   :  { %840 = vmatpush.msra.mxu3 %v1536_v58  ;;  %v748_v9 = vrot.slane %v747_v60, 1 }
 0x365   :  { %1354 = vmatmul.msk.f32.gmra.mxu3 %vm81_vm1, %v406_v39 }
 0x366   :  { %v749_v58 = vmax.f32 %v747_v60, %v748_v9  ;;  %v798_v11 = vpop.trf.xlu2 }
 0x367   :  { %551 = vxpose.xlu1.b32.cont [3/4] (short) (narrow) %v1359_v43, 32 }
 0x368   :  { %v750_v2 = vsub.f32 %v735_v54, %v749_v58  ;;  %v751_v10 = vsub.f32 %v738_v56, %v749_v58 }
 0x36a   :  { %v752_v5 = vmul.f32 1.442695, %v750_v2  ;;  %v754_v6 = vmul.f32 1.442695, %v751_v10 }
 0x36c   :  { %1438 = vpow2.f32 %v752_v5 }
 0x36d   :  { %1355 = vmatmul.msk.f32.gmra.mxu3 %vm81_vm1, %v409_v46  ;;  %1440 = vpow2.f32 %v754_v6 }
 0x36e   :  { %v799_v13 = vpop.trf.xlu2 }
 0x36f   :  { %552 = vxpose.xlu1.b32.end [4/4] (short) (narrow) %v1360_v45, 32 }
 0x372   :  { %v1439_v7 = vpop.eup %1438 }
 0x373   :  { %v1441_v12 = vpop.eup %1440  ;;  %v756_v14 = vsel %vm81_vm1, %v1439_v7, 0.0 }
 0x374   :  { %v757_v15 = vsel %vm81_vm1, %v1441_v12, 0.0 }
 0x375   :  { %1356 = vmatmul.msk.f32.gmra.mxu3 %vm81_vm1, %v412_v53  ;;  %v758_v16 = vadd.f32 %v757_v15, %v756_v14 }
 0x376   :  { %v800_v20 = vpop.trf.xlu2 }
 0x377   :  { %v759_v17 = vrot.slane %v758_v16, 4 }
 0x379   :  { %v760_v18 = vadd.f32 %v759_v17, %v758_v16 }
 0x37b   :  { %v761_v19 = vrot.slane %v760_v18, 2 }
 0x37d   :  { %1377 = vmatmul.msk.f32.vlgmr.msra.gmra.mxu3 %vm51_vm0, %v797_v4  ;;  %v762_v21 = vadd.f32 %v761_v19, %v760_v18 }
 0x37f   :  { %v763_v22 = vrot.slane %v762_v21, 1 }
 0x381   :  { %v764_v23 = vadd.f32 %v763_v22, %v762_v21 }
 0x383   :  { %1442 = vrcp.f32 %v764_v23  ;;  %v776_v26 = vand.u32 2147483648, %v764_v23  ;;  %vm770_vm10 = vweird.f32 %v764_v23  ;;  %v774_v28 = vand.u32 2147483647, %v764_v23 }
 0x385   :  { %1378 = vmatmul.msk.f32.gmra.mxu3 %vm51_vm0, %v798_v11  ;;  %v777_v30 = vor.u32 1.1754944e-38, %v776_v26  ;;  %vm775_vm13 = vcmp.eq.f32.partialorder %v774_v28, 8.507059e+37 }
 0x389   :  { %v1443_v24 = vpop.eup %1442 }
 0x38a   :  { %v766_v25 = vmul.f32 %v1443_v24, %v764_v23  ;;  %vm771_vm11 = vweird.f32 %v1443_v24 }
 0x38b   :  { %vm772_vm12 = vmor %vm770_vm10, %vm771_vm11 }
 0x38c   :  { %v767_v27 = vsub.f32 1.0, %v766_v25 }
 0x38d   :  { %1379 = vmatmul.msk.f32.gmra.mxu3 %vm51_vm0, %v799_v13 }
 0x38e   :  { %v768_v29 = vmul.f32 %v1443_v24, %v767_v27 }
 0x390   :  { %v769_v31 = vadd.f32 %v1443_v24, %v768_v29 }
 0x392   :  { %v773_v32 = vsel %vm772_vm12, %v1443_v24, %v769_v31 }
 0x393   :  { %v778_v33 = vsel %vm775_vm13, %v777_v30, %v773_v32 }
 0x394   :  { %v780_v34 = vmul.f32 %v1441_v12, %v778_v33  ;;  %v779_v35 = vmul.f32 %v1439_v7, %v778_v33 }
 0x395   :  { %1380 = vmatmul.msk.f32.gmra.mxu3 %vm51_vm0, %v800_v20 }
 0x396   :  { %880 = vmatpush.msrb.mxu0 %v780_v34 }
 0x398   :  { %881 = vmatpush.msrb.mxu0 %v779_v35 }
 0x3e0   :  { %v444_v36 = vpop.f32.mrf.mxu3 }
 0x3e1   :  { %461 = vxpose.xlu0.b32.start [1/4] (short) (narrow) %v444_v36, 16 }
 0x3e8   :  { %v447_v37 = vpop.f32.mrf.mxu3 }
 0x3e9   :  { %462 = vxpose.xlu0.b32.cont [2/4] (short) (narrow) %v447_v37, 16 }
 0x3f0   :  { %v450_v38 = vpop.f32.mrf.mxu3 }
 0x3f1   :  { %463 = vxpose.xlu0.b32.cont [3/4] (short) (narrow) %v450_v38, 16 }
 0x3f8   :  { %v453_v39 = vpop.f32.mrf.mxu3 }
 0x3f9   :  { %464 = vxpose.xlu0.b32.end [4/4] (short) (narrow) %v453_v39, 16  ;;  %511 = vmatpush.msra.mxu2 %v453_v39 }
 0x3fa   :  { %605 = vmatpush.msra.mxu1 %v453_v39 }
 0x3fb   :  { %512 = vmatpush.msra.mxu2 %v450_v38 }
 0x3fc   :  { %606 = vmatpush.msra.mxu1 %v450_v38 }
 0x3fd   :  { %513 = vmatpush.msra.mxu2 %v447_v37 }
 0x3fe   :  { %607 = vmatpush.msra.mxu1 %v447_v37 }
 0x3ff   :  { %514 = vmatpush.msra.mxu2 %v444_v36 }
 0x400   :  { %608 = vmatpush.msra.mxu1 %v444_v36  ;;  %v842_v42 = vpop.f32.mrf.mxu3 }
 0x401   :  { %1381 = vmatmul.msk.f32.vlgmr.msrb.gmra.mxu0 %vm81_vm1, %v842_v42  ;;  %1000 = vxpose.xlu0.b32.start [1/4] (short) (narrow) %v1530_v57, 32 }
 0x408   :  { %v845_v44 = vpop.f32.mrf.mxu3 }
 0x409   :  { %1382 = vmatmul.msk.f32.gmra.mxu0 %vm81_vm1, %v845_v44  ;;  %1001 = vxpose.xlu0.b32.cont [2/4] (short) (narrow) %v1542_v59, 32 }
 0x410   :  { %v848_v46 = vpop.f32.mrf.mxu3 }
 0x411   :  { %1383 = vmatmul.msk.f32.gmra.mxu0 %vm81_vm1, %v848_v46  ;;  %1002 = vxpose.xlu0.b32.cont [3/4] (short) (narrow) %v1554_v62, 32 }
 0x418   :  { %v851_v57 = vpop.f32.mrf.mxu3 }
 0x419   :  { %1384 = vmatmul.msk.f32.gmra.mxu0 %vm81_vm1, %v851_v57  ;;  %1003 = vxpose.xlu0.b32.end [4/4] (short) (narrow) %v1566_v3, 32  ;;  %v565_v3 = vpop.trf.xlu1 }
 0x41a   :  { %1363 = vmatmul.msk.f32.vlgmr.msra.gmra.mxu1 %vm51_vm0, %v565_v3 }
 0x421   :  { %v566_v51 = vpop.trf.xlu1 }
 0x422   :  { %1364 = vmatmul.msk.f32.gmra.mxu1 %vm51_vm0, %v566_v51 }
 0x429   :  { %v567_v52 = vpop.trf.xlu1 }
 0x42a   :  { %1365 = vmatmul.msk.f32.gmra.mxu1 %vm51_vm0, %v567_v52 }
 0x431   :  { %v568_v53 = vpop.trf.xlu1 }
 0x432   :  { %1366 = vmatmul.msk.f32.gmra.mxu1 %vm51_vm0, %v568_v53 }
 0x47e   :  { %v1631_v47 = vpop.f32.mrf.mxu0 }
 0x47f   :  { %899 = vxpose.xlu2.b32.start [1/4] (short) (narrow) %v1631_v47, 16 }
 0x485   :  { %v477_v59 = vpop.trf.xlu0 }
 0x486   :  { %1361 = vmatmul.msk.f32.vlgmr.msra.gmra.mxu2 %vm51_vm0, %v477_v59  ;;  %v1635_v48 = vpop.f32.mrf.mxu0 }
 0x487   :  { %900 = vxpose.xlu2.b32.cont [2/4] (short) (narrow) %v1635_v48, 16 }
 0x48d   :  { %v478_v49 = vpop.trf.xlu0 }
 0x48e   :  { %1362 = vmatmul.msk.f32.gmra.mxu2 %vm51_vm0, %v478_v49  ;;  %v889_v62 = vpop.f32.mrf.mxu0 }
 0x48f   :  { %901 = vxpose.xlu2.b32.cont [3/4] (short) (narrow) %v889_v62, 16 }
 0x496   :  { %v892_v50 = vpop.f32.mrf.mxu0 }
 0x497   :  { %902 = vxpose.xlu2.b32.end [4/4] (short) (narrow) %v892_v50, 16  ;;  %949 = vmatpush.msrb.mxu1 %v892_v50  ;;  %v610_v22 = vpop.f32.mrf.mxu1 }
 0x499   :  { %950 = vmatpush.msrb.mxu1 %v889_v62 }
 0x49b   :  { %951 = vmatpush.msrb.mxu1 %v1635_v48 }
 0x49d   :  { %952 = vmatpush.msrb.mxu1 %v1631_v47 }
 0x49f   :  { %1206 = vxpose.xlu2.b32.start [1/4] (short) (narrow) %v1357_v40, 32  ;;  %v613_v26 = vpop.f32.mrf.mxu1 }
 0x4a5   :  { %v1016_v29 = vpop.trf.xlu0 }
 0x4a7   :  { %1207 = vxpose.xlu2.b32.cont [2/4] (short) (narrow) %v1358_v41, 32  ;;  %v616_v27 = vpop.f32.mrf.mxu1 }
 0x4ad   :  { %v1017_v30 = vpop.trf.xlu0 }
 0x4af   :  { %1208 = vxpose.xlu2.b32.cont [3/4] (short) (narrow) %v1359_v43, 32  ;;  %v619_v28 = vpop.f32.mrf.mxu1 }
 0x4b5   :  { %v1018_v31 = vpop.trf.xlu0 }
 0x4b7   :  { %1209 = vxpose.xlu2.b32.end [4/4] (short) (narrow) %v1360_v45, 32 }
 0x4bd   :  { %v1019_v32 = vpop.trf.xlu0 }
 0x509   :  { %v516_v54 = vpop.f32.mrf.mxu2 }
 0x50a   :  { %v522_v56 = vsel %vm81_vm1, %v516_v54, -inf }
 0x511   :  { %v519_v55 = vpop.f32.mrf.mxu2 }
 0x512   :  { %v523_v61 = vsel %vm81_vm1, %v519_v55, -inf }
 0x513   :  { %v524_v0 = vmax.f32 %v522_v56, %v523_v61 }
 0x515   :  { %v525_v1 = vrot.slane %v524_v0, 4 }
 0x517   :  { %v526_v8 = vmax.f32 %v524_v0, %v525_v1 }
 0x518   :  { %v915_v4 = vpop.trf.xlu2 }
 0x519   :  { %v527_v63 = vrot.slane %v526_v8, 2  ;;  %1389 = vmatmul.msk.f32.vlgmr.msrb.gmra.mxu1 %vm51_vm0, %v915_v4 }
 0x51b   :  { %v528_v60 = vmax.f32 %v526_v8, %v527_v63 }
 0x51d   :  { %v529_v9 = vrot.slane %v528_v60, 1 }
 0x51f   :  { %v530_v58 = vmax.f32 %v528_v60, %v529_v9 }
 0x520   :  { %v916_v2 = vpop.trf.xlu2 }
 0x521   :  { %v531_v10 = vsub.f32 %v516_v54, %v530_v58  ;;  %v532_v11 = vsub.f32 %v519_v55, %v530_v58  ;;  %1390 = vmatmul.msk.f32.gmra.mxu1 %vm51_vm0, %v916_v2 }
 0x523   :  { %v533_v5 = vmul.f32 1.442695, %v531_v10  ;;  %v535_v6 = vmul.f32 1.442695, %v532_v11 }
 0x525   :  { %1444 = vpow2.f32 %v533_v5 }
 0x526   :  { %1446 = vpow2.f32 %v535_v6 }
 0x52b   :  { %v1445_v7 = vpop.eup %1444 }
 0x52c   :  { %v1447_v12 = vpop.eup %1446  ;;  %v537_v13 = vsel %vm81_vm1, %v1445_v7, 0.0 }
 0x52d   :  { %v538_v14 = vsel %vm81_vm1, %v1447_v12, 0.0 }
 0x52e   :  { %v539_v15 = vadd.f32 %v538_v14, %v537_v13 }
 0x530   :  { %v540_v16 = vrot.slane %v539_v15, 4 }
 0x532   :  { %v541_v17 = vadd.f32 %v540_v16, %v539_v15 }
 0x534   :  { %v542_v18 = vrot.slane %v541_v17, 2 }
 0x536   :  { %v543_v19 = vadd.f32 %v542_v18, %v541_v17 }
 0x538   :  { %v544_v20 = vrot.slane %v543_v19, 1 }
 0x53a   :  { %v545_v21 = vadd.f32 %v544_v20, %v543_v19 }
 0x53c   :  { %1448 = vrcp.f32 %v545_v21 }
 0x542   :  { %v1449_v23 = vpop.eup %1448 }
 0x543   :  { %v548_v24 = vmul.f32 %v1449_v23, %v1447_v12  ;;  %v547_v25 = vmul.f32 %v1449_v23, %v1445_v7  ;;  %v1222_v23 = vpop.trf.xlu2 }
 0x545   :  { %648 = vmatpush.msrb.mxu2 %v548_v24 }
 0x547   :  { %649 = vmatpush.msrb.mxu2 %v547_v25 }
 0x548   :  { %1367 = vmatmul.msk.f32.vlgmr.msrb.gmra.mxu2 %vm81_vm1, %v610_v22 }
 0x549   :  { %1056 = vmatpush.msra.mxu2 %v892_v50 }
 0x54b   :  { %1057 = vmatpush.msra.mxu2 %v889_v62  ;;  %v1223_v24 = vpop.trf.xlu2 }
 0x54d   :  { %1058 = vmatpush.msra.mxu2 %v1635_v48 }
 0x54f   :  { %1059 = vmatpush.msra.mxu2 %v1631_v47 }
 0x550   :  { %1368 = vmatmul.msk.f32.gmra.mxu2 %vm81_vm1, %v613_v26 }
 0x553   :  { %v1224_v25 = vpop.trf.xlu2 }
 0x558   :  { %1369 = vmatmul.msk.f32.gmra.mxu2 %vm81_vm1, %v616_v27 }
 0x55b   :  { %v1225_v27 = vpop.trf.xlu2 }
 0x560   :  { %1370 = vmatmul.msk.f32.gmra.mxu2 %vm81_vm1, %v619_v28 }
 0x568   :  { %1391 = vmatmul.msk.f32.vlgmr.msra.gmra.mxu2 %vm51_vm0, %v1016_v29 }
 0x570   :  { %1392 = vmatmul.msk.f32.gmra.mxu2 %vm51_vm0, %v1017_v30 }
 0x578   :  { %1393 = vmatmul.msk.f32.gmra.mxu2 %vm51_vm0, %v1018_v31 }
 0x580   :  { %1394 = vmatmul.msk.f32.gmra.mxu2 %vm51_vm0, %v1019_v32 }
 0x596   :  { %v954_v33 = vpop.f32.mrf.mxu1 }
 0x597   :  { %v960_v34 = vsel %vm81_vm1, %v954_v33, -inf }
 0x59e   :  { %v957_v35 = vpop.f32.mrf.mxu1 }
 0x59f   :  { %v961_v36 = vsel %vm81_vm1, %v957_v35, -inf }
 0x5a0   :  { %v962_v37 = vmax.f32 %v960_v34, %v961_v36 }
 0x5a2   :  { %v963_v38 = vrot.slane %v962_v37, 4 }
 0x5a4   :  { %v964_v39 = vmax.f32 %v962_v37, %v963_v38 }
 0x5a6   :  { %v965_v40 = vrot.slane %v964_v39, 2 }
 0x5a8   :  { %v966_v41 = vmax.f32 %v964_v39, %v965_v40 }
 0x5aa   :  { %v967_v42 = vrot.slane %v966_v41, 1 }
 0x5ac   :  { %v968_v43 = vmax.f32 %v966_v41, %v967_v42 }
 0x5ae   :  { %v969_v44 = vsub.f32 %v954_v33, %v968_v43  ;;  %v970_v45 = vsub.f32 %v957_v35, %v968_v43 }
 0x5b0   :  { %v971_v46 = vmul.f32 1.442695, %v969_v44  ;;  %v973_v57 = vmul.f32 1.442695, %v970_v45 }
 0x5b2   :  { %1450 = vpow2.f32 %v971_v46 }
 0x5b3   :  { %1452 = vpow2.f32 %v973_v57 }
 0x5b8   :  { %v1451_v47 = vpop.eup %1450 }
 0x5b9   :  { %v1453_v59 = vpop.eup %1452  ;;  %v975_v48 = vsel %vm81_vm1, %v1451_v47, 0.0 }
 0x5ba   :  { %v976_v49 = vsel %vm81_vm1, %v1453_v59, 0.0 }
 0x5bb   :  { %v977_v62 = vadd.f32 %v976_v49, %v975_v48 }
 0x5bd   :  { %v978_v50 = vrot.slane %v977_v62, 4 }
 0x5bf   :  { %v979_v3 = vadd.f32 %v978_v50, %v977_v62 }
 0x5c1   :  { %v980_v51 = vrot.slane %v979_v3, 2 }
 0x5c3   :  { %v981_v52 = vadd.f32 %v980_v51, %v979_v3 }
 0x5c5   :  { %v982_v53 = vrot.slane %v981_v52, 1 }
 0x5c7   :  { %v983_v54 = vadd.f32 %v982_v53, %v981_v52 }
 0x5c9   :  { %1454 = vrcp.f32 %v983_v54  ;;  %v995_v4 = vand.u32 2147483648, %v983_v54  ;;  %v993_v9 = vand.u32 2147483647, %v983_v54  ;;  %vm989_vm15 = vweird.f32 %v983_v54 }
 0x5cb   :  { %v651_v55 = vpop.f32.mrf.mxu2  ;;  %v996_v2 = vor.u32 1.1754944e-38, %v995_v4  ;;  %vm994_vm3 = vcmp.eq.f32.partialorder %v993_v9, 8.507059e+37 }
 0x5cc   :  { %v663_v56 = vmax.f32 %v651_v55, 0.0 }
 0x5ce   :  { %667 = vst.msk [vmem:[%s1717_s2] sm:$0xff] %vm81_vm1, %v663_v56 }
 0x5cf   :  { %v1455_v61 = vpop.eup %1454 }
 0x5d0   :  { %v985_v0 = vmul.f32 %v1455_v61, %v983_v54  ;;  %vm990_vm14 = vweird.f32 %v1455_v61 }
 0x5d1   :  { %vm991_vm2 = vmor %vm989_vm15, %vm990_vm14 }
 0x5d2   :  { %v986_v1 = vsub.f32 1.0, %v985_v0 }
 0x5d3   :  { %v654_v8 = vpop.f32.mrf.mxu2 }
 0x5d4   :  { %v664_v63 = vmax.f32 %v654_v8, 0.0  ;;  %v987_v60 = vmul.f32 %v1455_v61, %v986_v1 }
 0x5d6   :  { %668 = vst.msk [vmem:[%s1717_s2 + $0x8] sm:$0xff] %vm81_vm1, %v664_v63  ;;  %v988_v58 = vadd.f32 %v1455_v61, %v987_v60 }
 0x5d8   :  { %v992_v10 = vsel %vm991_vm2, %v1455_v61, %v988_v58 }
 0x5d9   :  { %v997_v11 = vsel %vm994_vm3, %v996_v2, %v992_v10 }
 0x5da   :  { %v999_v5 = vmul.f32 %v1453_v59, %v997_v11  ;;  %v998_v12 = vmul.f32 %v1451_v47, %v997_v11 }
 0x5db   :  { %v657_v6 = vpop.f32.mrf.mxu2 }
 0x5dc   :  { %v665_v7 = vmax.f32 %v657_v6, 0.0  ;;  %1099 = vmatpush.msra.mxu1 %v999_v5 }
 0x5de   :  { %669 = vst.msk [vmem:[%s1717_s2 + $0x10] sm:$0xff] %vm81_vm1, %v665_v7  ;;  %1100 = vmatpush.msra.mxu1 %v998_v12 }
 0x5e3   :  { %v660_v13 = vpop.f32.mrf.mxu2 }
 0x5e4   :  { %v666_v14 = vmax.f32 %v660_v13, 0.0 }
 0x5e6   :  { %670 = vst.msk [vmem:[%s1717_s2 + $0x18] sm:$0xff] %vm81_vm1, %v666_v14 }
 0x5eb   :  { %v1061_v15 = vpop.f32.mrf.mxu2 }
 0x5ec   :  { %1395 = vmatmul.msk.f32.vlgmr.msra.gmra.mxu1 %vm81_vm1, %v1061_v15 }
 0x5f3   :  { %v1064_v16 = vpop.f32.mrf.mxu2 }
 0x5f4   :  { %1396 = vmatmul.msk.f32.gmra.mxu1 %vm81_vm1, %v1064_v16 }
 0x5fb   :  { %v1067_v17 = vpop.f32.mrf.mxu2 }
 0x5fc   :  { %1397 = vmatmul.msk.f32.gmra.mxu1 %vm81_vm1, %v1067_v17 }
 0x603   :  { %v1070_v18 = vpop.f32.mrf.mxu2 }
 0x604   :  { %1398 = vmatmul.msk.f32.gmra.mxu1 %vm81_vm1, %v1070_v18 }
 0x669   :  { %v1102_v19 = vpop.f32.mrf.mxu1 }
 0x66a   :  { %1118 = vxpose.xlu1.b32.start [1/4] (short) (narrow) %v1102_v19, 16 }
 0x671   :  { %v1105_v20 = vpop.f32.mrf.mxu1 }
 0x672   :  { %1119 = vxpose.xlu1.b32.cont [2/4] (short) (narrow) %v1105_v20, 16 }
 0x679   :  { %v1108_v21 = vpop.f32.mrf.mxu1 }
 0x67a   :  { %1120 = vxpose.xlu1.b32.cont [3/4] (short) (narrow) %v1108_v21, 16 }
 0x681   :  { %v1111_v22 = vpop.f32.mrf.mxu1 }
 0x682   :  { %1121 = vxpose.xlu1.b32.end [4/4] (short) (narrow) %v1111_v22, 16  ;;  %1168 = vmatpush.msrb.mxu3 %v1111_v22 }
 0x683   :  { %1262 = vmatpush.msra.mxu0 %v1111_v22 }
 0x684   :  { %1169 = vmatpush.msrb.mxu3 %v1108_v21 }
 0x685   :  { %1263 = vmatpush.msra.mxu0 %v1108_v21 }
 0x686   :  { %1170 = vmatpush.msrb.mxu3 %v1105_v20 }
 0x687   :  { %1264 = vmatpush.msra.mxu0 %v1105_v20 }
 0x688   :  { %1171 = vmatpush.msrb.mxu3 %v1102_v19 }
 0x689   :  { %1265 = vmatpush.msra.mxu0 %v1102_v19 }
 0x68a   :  { %1405 = vmatmul.msk.f32.vlgmr.msra.gmra.mxu0 %vm51_vm0, %v1222_v23 }
 0x692   :  { %1406 = vmatmul.msk.f32.gmra.mxu0 %vm51_vm0, %v1223_v24 }
 0x69a   :  { %1407 = vmatmul.msk.f32.gmra.mxu0 %vm51_vm0, %v1224_v25 }
 0x6a2   :  { %1408 = vmatmul.msk.f32.gmra.mxu0 %vm51_vm0, %v1225_v27 }
 0x707   :  { %v1267_v51 = vpop.f32.mrf.mxu0 }
 0x70e   :  { %v1134_v26 = vpop.trf.xlu1 }
 0x70f   :  { %1403 = vmatmul.msk.f32.vlgmr.msrb.gmra.mxu3 %vm51_vm0, %v1134_v26  ;;  %v1270_v55 = vpop.f32.mrf.mxu0 }
 0x716   :  { %v1135_v28 = vpop.trf.xlu1 }
 0x717   :  { %1404 = vmatmul.msk.f32.gmra.mxu3 %vm51_vm0, %v1135_v28  ;;  %v1273_v56 = vpop.f32.mrf.mxu0 }
 0x71f   :  { %v1276_v61 = vpop.f32.mrf.mxu0 }
 0x792   :  { %v1173_v29 = vpop.f32.mrf.mxu3 }
 0x793   :  { %v1179_v31 = vsel %vm81_vm1, %v1173_v29, -inf }
 0x79a   :  { %v1176_v30 = vpop.f32.mrf.mxu3 }
 0x79b   :  { %v1180_v32 = vsel %vm81_vm1, %v1176_v30, -inf }
 0x79c   :  { %v1181_v33 = vmax.f32 %v1179_v31, %v1180_v32 }
 0x79e   :  { %v1182_v34 = vrot.slane %v1181_v33, 4 }
 0x7a0   :  { %v1183_v35 = vmax.f32 %v1181_v33, %v1182_v34 }
 0x7a2   :  { %v1184_v36 = vrot.slane %v1183_v35, 2 }
 0x7a4   :  { %v1185_v37 = vmax.f32 %v1183_v35, %v1184_v36 }
 0x7a6   :  { %v1186_v38 = vrot.slane %v1185_v37, 1 }
 0x7a8   :  { %v1187_v39 = vmax.f32 %v1185_v37, %v1186_v38 }
 0x7aa   :  { %v1188_v40 = vsub.f32 %v1173_v29, %v1187_v39  ;;  %v1189_v41 = vsub.f32 %v1176_v30, %v1187_v39 }
 0x7ac   :  { %v1190_v42 = vmul.f32 1.442695, %v1188_v40  ;;  %v1192_v43 = vmul.f32 1.442695, %v1189_v41 }
 0x7ae   :  { %1456 = vpow2.f32 %v1190_v42 }
 0x7af   :  { %1458 = vpow2.f32 %v1192_v43 }
 0x7b4   :  { %v1457_v44 = vpop.eup %1456 }
 0x7b5   :  { %v1459_v45 = vpop.eup %1458  ;;  %v1194_v46 = vsel %vm81_vm1, %v1457_v44, 0.0 }
 0x7b6   :  { %v1195_v57 = vsel %vm81_vm1, %v1459_v45, 0.0 }
 0x7b7   :  { %v1196_v47 = vadd.f32 %v1195_v57, %v1194_v46 }
 0x7b9   :  { %v1197_v59 = vrot.slane %v1196_v47, 4 }
 0x7bb   :  { %v1198_v48 = vadd.f32 %v1197_v59, %v1196_v47 }
 0x7bd   :  { %v1199_v49 = vrot.slane %v1198_v48, 2 }
 0x7bf   :  { %v1200_v62 = vadd.f32 %v1199_v49, %v1198_v48 }
 0x7c1   :  { %v1201_v50 = vrot.slane %v1200_v62, 1 }
 0x7c3   :  { %v1202_v3 = vadd.f32 %v1201_v50, %v1200_v62 }
 0x7c5   :  { %1460 = vrcp.f32 %v1202_v3 }
 0x7cb   :  { %v1461_v52 = vpop.eup %1460 }
 0x7cc   :  { %v1205_v53 = vmul.f32 %v1461_v52, %v1459_v45  ;;  %v1204_v54 = vmul.f32 %v1461_v52, %v1457_v44 }
 0x7ce   :  { %1305 = vmatpush.msra.mxu3 %v1205_v53 }
 0x7d0   :  { %1306 = vmatpush.msra.mxu3 %v1204_v54 }
 0x7d1   :  { %1409 = vmatmul.msk.f32.vlgmr.msra.gmra.mxu3 %vm81_vm1, %v1267_v51 }
 0x7d9   :  { %1410 = vmatmul.msk.f32.gmra.mxu3 %vm81_vm1, %v1270_v55 }
 0x7e1   :  { %1411 = vmatmul.msk.f32.gmra.mxu3 %vm81_vm1, %v1273_v56 }
 0x7e9   :  { %1412 = vmatmul.msk.f32.gmra.mxu3 %vm81_vm1, %v1276_v61 }
 0x854   :  { %v1308_v0 = vpop.f32.mrf.mxu3 }
 0x855   :  { %v1320_v1 = vmax.f32 %v1308_v0, 0.0 }
 0x857   :  { %1413 = vst.msk [vmem:[%s1717_s2 + $0x20] sm:$0xff] %vm81_vm1, %v1320_v1 }
 0x85c   :  { %v1311_v8 = vpop.f32.mrf.mxu3 }
 0x85d   :  { %v1321_v4 = vmax.f32 %v1311_v8, 0.0 }
 0x85f   :  { %1414 = vst.msk [vmem:[%s1717_s2 + $0x28] sm:$0xff] %vm81_vm1, %v1321_v4 }
 0x864   :  { %v1314_v63 = vpop.f32.mrf.mxu3 }
 0x865   :  { %v1322_v60 = vmax.f32 %v1314_v63, 0.0 }
 0x867   :  { %1415 = vst.msk [vmem:[%s1717_s2 + $0x30] sm:$0xff] %vm81_vm1, %v1322_v60 }
 0x86c   :  { %v1317_v9 = vpop.f32.mrf.mxu3 }
 0x86d   :  { %v1323_v58 = vmax.f32 %v1317_v9, 0.0 }
 0x86f   :  { %1416 = vst.msk [vmem:[%s1717_s2 + $0x38] sm:$0xff] %vm81_vm1, %v1323_v58 }

</bundles_post_ra>
